<compile_context>
chip_gen: v7x
topology: tpu7x:2x2x1
jax: 0.10.0
libtpu: 0.0.40
codegen_flags: <defaults>
</compile_context>

<pallas_src>
import jax
import jax.numpy as jnp
from jax import lax
from jax.experimental import pallas as pl
from jax.experimental.pallas import tpu as pltpu


_COMPUTE_CHUNK = 256   # rows of a batch tile processed per inner fori_loop step


def _round_up(x, m):
    return -(-x // m) * m


def _make_kernel(coord_size, chunk, num_chunks, emit_probs):
    def kernel(x_ref, wt_ref, b_ref, *out_refs):
        # Blocks: x (C, TB, D); W^T (C, D, N); bias (C, 1, N); outputs (C, TB, N).
        logp_ref = out_refs[0]
        probs_ref = out_refs[1] if emit_probs else None

        for c in range(coord_size):                       # static unroll; coord_size is small
            w_c = wt_ref[c]                               # (D, N) -- VMEM-resident across grid
            b_c = b_ref[c]                                # (1, N)

            def body(i, carry, c=c, w_c=w_c, b_c=b_c):
                start = pl.multiple_of(i * chunk, chunk)
                rows = pl.ds(start, chunk)
                x = x_ref[c, rows, :]                     # (chunk, D)

                # nn.Linear on the MXU: logits = x @ W^T + b (W stored pre-transposed).
                logits = jnp.dot(x, w_c, preferred_element_type=jnp.float32) + b_c

                # Numerically-stable softmax / log-softmax; exp() evaluated once and
                # reused for both the denominator and probs.
                m = jnp.max(logits, axis=-1, keepdims=True)
                s = logits - m
                e = jnp.exp(s)
                denom = jnp.sum(e, axis=-1, keepdims=True)

                logp_ref[c, rows, :] = (s - jnp.log(denom)).astype(logp_ref.dtype)
                if emit_probs:
                    inv = pl.reciprocal(denom)            # exact: rows sum to 1 within 1e-5
                    probs_ref[c, rows, :] = (e * inv).astype(probs_ref.dtype)
                return carry

            # fori_loop (not a Python loop) bounds the live range of the per-chunk
            # intermediates, so large DMA tiles don't blow up compute scratch.
            lax.fori_loop(0, num_chunks, body, 0)

    return kernel


def _pick_batch_tile(batch, coord_size, num_inputs, num_outputs, num_out_arrays,
                     block_budget_bytes=18 * 1024 * 1024):
    """Size the batch tile from a VMEM block budget (double-buffered, lane-padded).

    Targets >= ~1-2 MB of streamed data per grid step (amortizing the ~0.35 us/step
    overhead) while keeping the double-buffered pipeline comfortably inside v7x's
    64 MiB VMEM per TensorCore (v5e/v6e have 128 MiB)."""
    lane = lambda d: _round_up(d, 128)
    # Double-buffered, lane-padded VMEM bytes per batch row (x + outputs).
    per_row = 2 * coord_size * 4 * (lane(num_inputs) + num_out_arrays * lane(num_outputs))
    resident = 2 * coord_size * 4 * (num_inputs + 8) * lane(num_outputs)   # W^T + bias blocks
    tb_cap = (block_budget_bytes - resident) // max(per_row, 1)
    tb_cap = max(_COMPUTE_CHUNK, min(tb_cap, 8192))
    tb_cap = (tb_cap // _COMPUTE_CHUNK) * _COMPUTE_CHUNK

    if batch <= _COMPUTE_CHUNK:
        return _round_up(batch, 8)                 # one small tile covers the whole batch

    b_pad = _round_up(batch, _COMPUTE_CHUNK)
    tb = min(tb_cap, b_pad)
    # Keep >= 2 grid steps when there is enough work so both v7x TensorCores get a slice.
    if b_pad // tb < 2 and b_pad >= 2 * _COMPUTE_CHUNK:
        tb = _round_up(b_pad // 2, _COMPUTE_CHUNK)
    return tb


def prepare_params(weights, biases):
    """One-time parameter repack: persistent W^T layout (C, D, N) + bias (C, 1, N).

    Done once at parameter-build time (not per forward call) so the kernel's MXU
    consumes weights in stored orientation with no per-call XLA transpose."""
    w_t = jnp.swapaxes(weights, 1, 2)                       # (C, N, D) -> (C, D, N)
    b = biases.reshape(biases.shape[0], 1, -1)              # (C, 1, N)
    return jnp.asarray(w_t, jnp.float32), jnp.asarray(b, jnp.float32)


def categorical_forward(x, w_t, biases, *, batch_tile=None, emit_probs=True):
    """x: (C, B, D); w_t: (C, D, N) pre-transposed nn.Linear weights; biases: (C, 1, N).

    Returns (log_probs, probs) [or just log_probs if emit_probs=False], each (C, B, N):
    the normalized log-probs / probs parameterizing the per-coord FixedCategorical."""
    C, B, D = x.shape
    _, _, N = w_t.shape
    n_out = 2 if emit_probs else 1

    if batch_tile is None:
        batch_tile = _pick_batch_tile(B, C, D, N, n_out)
    if batch_tile % 8 != 0 or (batch_tile > _COMPUTE_CHUNK and batch_tile % _COMPUTE_CHUNK != 0):
        raise ValueError(
            f"batch_tile={batch_tile} must be a multiple of 8 (and of {_COMPUTE_CHUNK} when larger)")

    # Pad the batch to a whole number of tiles (padded rows are computed then dropped);
    # no divisor requirement on B and no pathological tiny tiles / full-B blocks.
    num_tiles = pl.cdiv(B, batch_tile)
    b_pad = num_tiles * batch_tile
    if b_pad != B:
        x = jnp.pad(x, ((0, 0), (0, b_pad - B), (0, 0)))

    chunk = min(_COMPUTE_CHUNK, batch_tile)
    num_chunks = batch_tile // chunk
    kernel = _make_kernel(C, chunk, num_chunks, emit_probs)

    out_shape = [jax.ShapeDtypeStruct((C, b_pad, N), jnp.float32) for _ in range(n_out)]
    out_specs = [pl.BlockSpec((C, batch_tile, N), lambda bt: (0, bt, 0)) for _ in range(n_out)]

    grid_spec = pltpu.PrefetchScalarGridSpec(
        num_scalar_prefetch=0,
        grid=(num_tiles,),
        in_specs=[
            # x streams per batch tile (all coords at once).
            pl.BlockSpec((C, batch_tile, D), lambda bt: (0, bt, 0)),
            # W^T and bias depend on nothing -> fetched once, VMEM-resident across tiles.
            pl.BlockSpec((C, D, N), lambda bt: (0, 0, 0)),
            pl.BlockSpec((C, 1, N), lambda bt: (0, 0, 0)),
        ],
        out_specs=out_specs,
    )

    cost = pl.CostEstimate(
        flops=2 * C * b_pad * D * N,
        transcendentals=C * b_pad * (N + 2),          # exp per logit + log/reciprocal per row
        bytes_accessed=4 * C * (b_pad * D + D * N + N + n_out * b_pad * N),
    )

    outs = pl.pallas_call(
        kernel,
        out_shape=out_shape,
        grid_spec=grid_spec,
        cost_estimate=cost,
        compiler_params=pltpu.CompilerParams(
            # Single batch-tile axis, no cross-step carry -> megacore sharding on v7x.
            dimension_semantics=("parallel",),
            # Safe on v5e/v6e/v7x; the tile budget above is sized well below it.
            vmem_limit_bytes=32 * 1024 * 1024,
        ),
    )(x, w_t, biases)

    outs = [o[:, :B] for o in outs]
    if emit_probs:
        return outs[0], outs[1]
    return outs[0]


def orthogonal_init(key, rows, cols, gain=0.01, dtype=jnp.float32):
    """Deterministic orthogonal init matching nn.init.orthogonal_ semantics."""
    n, m = max(rows, cols), min(rows, cols)
    a = jax.random.normal(key, (n, m), dtype=jnp.float32)
    q, r = jnp.linalg.qr(a)
    q = q * jnp.sign(jnp.diagonal(r))[None, :]        # sign correction, as in torch
    w = q if rows >= cols else q.T
    return (gain * w[:rows, :cols]).astype(dtype)


if __name__ == "__main__":
    # Small shapes consistent with the module: coord_size distributions over
    # num_outputs classes from num_inputs features.
    coord_size = 2
    batch = 16
    num_inputs = 32
    num_outputs = 16

    key = jax.random.PRNGKey(0)
    kx, *kw = jax.random.split(key, 1 + coord_size)

    # x[coord] per the PyTorch forward -> stacked coord-major input.
    x = jax.random.normal(kx, (coord_size, batch, num_inputs), dtype=jnp.float32)

    # Per-coord nn.Linear parameters: orthogonal_(gain=0.01) weight, zero bias.
    weights = jnp.stack(
        [orthogonal_init(kw[c], num_outputs, num_inputs, gain=0.01) for c in range(coord_size)]
    )                                                                    # (C, N, D)
    biases = jnp.zeros((coord_size, 1, num_outputs), dtype=jnp.float32)  # (C, 1, N)

    # One-time repack into the persistent kernel parameter layout.
    w_t, b = prepare_params(weights, biases)

    # Auto-picked tile (single grid step for this tiny batch) ...
    log_probs, probs = categorical_forward(x, w_t, b)
    # ... and an explicit small tile to exercise the multi-step pipelined grid.
    log_probs2, probs2 = categorical_forward(x, w_t, b, batch_tile=8)
    jax.block_until_ready((log_probs, probs, log_probs2, probs2))

    # Sanity check vs plain-JAX reference.
    logits_ref = jnp.einsum("cbd,cnd->cbn", x, weights) + b
    logp_ref = jax.nn.log_softmax(logits_ref, axis=-1)
    for lp, pr in ((log_probs, probs), (log_probs2, probs2)):
        assert lp.shape == (coord_size, batch, num_outputs)
        assert jnp.allclose(lp, logp_ref, atol=1e-5), "log_probs mismatch"
        assert jnp.allclose(pr, jnp.exp(logp_ref), atol=1e-5), "probs mismatch"
        assert jnp.allclose(jnp.sum(pr, axis=-1), 1.0, atol=1e-5), "probs not normalized"

    print("KERNEL_OK")
</pallas_src>

<mosaic_0001>
module attributes {stable_mosaic.version = 11 : i64} {
  func.func @kernel(%arg0: i32, %arg1: memref<2x16x32xf32, #tpu.memory_space<vmem>>, %arg2: memref<2x32x16xf32, #tpu.memory_space<vmem>>, %arg3: memref<2x1x16xf32, #tpu.memory_space<vmem>>, %arg4: memref<2x16x16xf32, #tpu.memory_space<vmem>>, %arg5: memref<2x16x16xf32, #tpu.memory_space<vmem>>) attributes {dimension_semantics = [#tpu.dimension_semantics<parallel>], iteration_bounds = array<i64: 1>, scalar_prefetch = 0 : i64, scratch_operands = 0 : i64, tpu.core_type = #tpu.core_type<tc>, window_params = [{transform_indices = @transform_0, window_bounds = array<i64: 2, 16, 32>}, {pipeline_mode = #tpu.pipeline_mode<synchronous>, transform_indices = @transform_1, window_bounds = array<i64: 2, 32, 16>}, {pipeline_mode = #tpu.pipeline_mode<synchronous>, transform_indices = @transform_2, window_bounds = array<i64: 2, 1, 16>}, {transform_indices = @transform_3, window_bounds = array<i64: 2, 16, 16>}, {transform_indices = @transform_4, window_bounds = array<i64: 2, 16, 16>}]} {
    %c0 = arith.constant 0 : index
    %c0_0 = arith.constant 0 : index
    %c0_1 = arith.constant 0 : index
    %0 = vector.load %arg2[%c0, %c0_0, %c0_1] : memref<2x32x16xf32, #tpu.memory_space<vmem>>, vector<1x32x16xf32>
    %1 = vector.shape_cast %0 : vector<1x32x16xf32> to vector<32x16xf32>
    %c0_2 = arith.constant 0 : index
    %c0_3 = arith.constant 0 : index
    %c0_4 = arith.constant 0 : index
    %2 = vector.load %arg3[%c0_2, %c0_3, %c0_4] : memref<2x1x16xf32, #tpu.memory_space<vmem>>, vector<1x1x16xf32>
    %3 = vector.shape_cast %2 : vector<1x1x16xf32> to vector<1x16xf32>
    %c0_i32 = arith.constant 0 : i32
    %c16_i32 = arith.constant 16 : i32
    %4 = arith.muli %c0_i32, %c16_i32 : i32
    %5 = tpu.assume_multiple %4, 16 : i32
    %c0_5 = arith.constant 0 : index
    %6 = arith.index_cast %5 : i32 to index
    %c0_6 = arith.constant 0 : index
    %7 = vector.load %arg1[%c0_5, %6, %c0_6] : memref<2x16x32xf32, #tpu.memory_space<vmem>>, vector<1x16x32xf32>
    %8 = vector.shape_cast %7 : vector<1x16x32xf32> to vector<16x32xf32>
    %cst = arith.constant dense<0.000000e+00> : vector<16x16xf32>
    %9 = tpu.matmul %8, %1, %cst {dimension_numbers = #tpu.dot_dimension_numbers<[1], [0], [0], [1], [0, 0, 1, 1], [], []>} : vector<16x32xf32>, vector<32x16xf32>, vector<16x16xf32> -> vector<16x16xf32>
    %10 = vector.broadcast %3 : vector<1x16xf32> to vector<16x16xf32>
    %11 = arith.addf %9, %10 : vector<16x16xf32>
    %cst_7 = arith.constant dense<0xFF800000> : vector<16xf32>
    %12 = vector.multi_reduction <maximumf>, %11, %cst_7 [1] : vector<16x16xf32> to vector<16xf32>
    %13 = vector.shape_cast %12 : vector<16xf32> to vector<16x1xf32>
    %14 = vector.broadcast %13 : vector<16x1xf32> to vector<16x16xf32>
    %15 = arith.subf %11, %14 : vector<16x16xf32>
    %16 = math.exp %15 : vector<16x16xf32>
    %cst_8 = arith.constant dense<0.000000e+00> : vector<16xf32>
    %17 = vector.multi_reduction <add>, %16, %cst_8 [1] : vector<16x16xf32> to vector<16xf32>
    %18 = vector.shape_cast %17 : vector<16xf32> to vector<16x1xf32>
    %19 = math.log %18 : vector<16x1xf32>
    %20 = vector.broadcast %19 : vector<16x1xf32> to vector<16x16xf32>
    %21 = arith.subf %15, %20 : vector<16x16xf32>
    %c0_9 = arith.constant 0 : index
    %22 = arith.index_cast %5 : i32 to index
    %c0_10 = arith.constant 0 : index
    %23 = vector.load %arg4[%c0_9, %22, %c0_10] : memref<2x16x16xf32, #tpu.memory_space<vmem>>, vector<1x16x16xf32>
    %24 = vector.shape_cast %23 : vector<1x16x16xf32> to vector<16x16xf32>
    %25 = vector.shape_cast %21 : vector<16x16xf32> to vector<1x16x16xf32>
    tpu.vector_store %arg4[%c0_9, %22, %c0_10], %25 {strides = array<i32>} : memref<2x16x16xf32, #tpu.memory_space<vmem>>, vector<1x16x16xf32>,
    %26 = tpu.reciprocal %18 : vector<16x1xf32> -> vector<16x1xf32>
    %27 = vector.broadcast %26 : vector<16x1xf32> to vector<16x16xf32>
    %28 = arith.mulf %16, %27 : vector<16x16xf32>
    %c0_11 = arith.constant 0 : index
    %29 = arith.index_cast %5 : i32 to index
    %c0_12 = arith.constant 0 : index
    %30 = vector.load %arg5[%c0_11, %29, %c0_12] : memref<2x16x16xf32, #tpu.memory_space<vmem>>, vector<1x16x16xf32>
    %31 = vector.shape_cast %30 : vector<1x16x16xf32> to vector<16x16xf32>
    %32 = vector.shape_cast %28 : vector<16x16xf32> to vector<1x16x16xf32>
    tpu.vector_store %arg5[%c0_11, %29, %c0_12], %32 {strides = array<i32>} : memref<2x16x16xf32, #tpu.memory_space<vmem>>, vector<1x16x16xf32>,
    %c1_i32 = arith.constant 1 : i32
    %c1 = arith.constant 1 : index
    %c0_13 = arith.constant 0 : index
    %c0_14 = arith.constant 0 : index
    %33 = vector.load %arg2[%c1, %c0_13, %c0_14] : memref<2x32x16xf32, #tpu.memory_space<vmem>>, vector<1x32x16xf32>
    %34 = vector.shape_cast %33 : vector<1x32x16xf32> to vector<32x16xf32>
    %c1_15 = arith.constant 1 : index
    %c0_16 = arith.constant 0 : index
    %c0_17 = arith.constant 0 : index
    %35 = vector.load %arg3[%c1_15, %c0_16, %c0_17] : memref<2x1x16xf32, #tpu.memory_space<vmem>>, vector<1x1x16xf32>
    %36 = vector.shape_cast %35 : vector<1x1x16xf32> to vector<1x16xf32>
    %c0_i32_18 = arith.constant 0 : i32
    %c16_i32_19 = arith.constant 16 : i32
    %37 = arith.muli %c0_i32_18, %c16_i32_19 : i32
    %38 = tpu.assume_multiple %37, 16 : i32
    %c1_20 = arith.constant 1 : index
    %39 = arith.index_cast %38 : i32 to index
    %c0_21 = arith.constant 0 : index
    %40 = vector.load %arg1[%c1_20, %39, %c0_21] : memref<2x16x32xf32, #tpu.memory_space<vmem>>, vector<1x16x32xf32>
    %41 = vector.shape_cast %40 : vector<1x16x32xf32> to vector<16x32xf32>
    %cst_22 = arith.constant dense<0.000000e+00> : vector<16x16xf32>
    %42 = tpu.matmul %41, %34, %cst_22 {dimension_numbers = #tpu.dot_dimension_numbers<[1], [0], [0], [1], [0, 0, 1, 1], [], []>} : vector<16x32xf32>, vector<32x16xf32>, vector<16x16xf32> -> vector<16x16xf32>
    %43 = vector.broadcast %36 : vector<1x16xf32> to vector<16x16xf32>
    %44 = arith.addf %42, %43 : vector<16x16xf32>
    %cst_23 = arith.constant dense<0xFF800000> : vector<16xf32>
    %45 = vector.multi_reduction <maximumf>, %44, %cst_23 [1] : vector<16x16xf32> to vector<16xf32>
    %46 = vector.shape_cast %45 : vector<16xf32> to vector<16x1xf32>
    %47 = vector.broadcast %46 : vector<16x1xf32> to vector<16x16xf32>
    %48 = arith.subf %44, %47 : vector<16x16xf32>
    %49 = math.exp %48 : vector<16x16xf32>
    %cst_24 = arith.constant dense<0.000000e+00> : vector<16xf32>
    %50 = vector.multi_reduction <add>, %49, %cst_24 [1] : vector<16x16xf32> to vector<16xf32>
    %51 = vector.shape_cast %50 : vector<16xf32> to vector<16x1xf32>
    %52 = math.log %51 : vector<16x1xf32>
    %53 = vector.broadcast %52 : vector<16x1xf32> to vector<16x16xf32>
    %54 = arith.subf %48, %53 : vector<16x16xf32>
    %c1_25 = arith.constant 1 : index
    %55 = arith.index_cast %38 : i32 to index
    %c0_26 = arith.constant 0 : index
    %56 = vector.load %arg4[%c1_25, %55, %c0_26] : memref<2x16x16xf32, #tpu.memory_space<vmem>>, vector<1x16x16xf32>
    %57 = vector.shape_cast %56 : vector<1x16x16xf32> to vector<16x16xf32>
    %58 = vector.shape_cast %54 : vector<16x16xf32> to vector<1x16x16xf32>
    tpu.vector_store %arg4[%c1_25, %55, %c0_26], %58 {strides = array<i32>} : memref<2x16x16xf32, #tpu.memory_space<vmem>>, vector<1x16x16xf32>,
    %59 = tpu.reciprocal %51 : vector<16x1xf32> -> vector<16x1xf32>
    %60 = vector.broadcast %59 : vector<16x1xf32> to vector<16x16xf32>
    %61 = arith.mulf %49, %60 : vector<16x16xf32>
    %c1_27 = arith.constant 1 : index
    %62 = arith.index_cast %38 : i32 to index
    %c0_28 = arith.constant 0 : index
    %63 = vector.load %arg5[%c1_27, %62, %c0_28] : memref<2x16x16xf32, #tpu.memory_space<vmem>>, vector<1x16x16xf32>
    %64 = vector.shape_cast %63 : vector<1x16x16xf32> to vector<16x16xf32>
    %65 = vector.shape_cast %61 : vector<16x16xf32> to vector<1x16x16xf32>
    tpu.vector_store %arg5[%c1_27, %62, %c0_28], %65 {strides = array<i32>} : memref<2x16x16xf32, #tpu.memory_space<vmem>>, vector<1x16x16xf32>,
    %c1_i32_29 = arith.constant 1 : i32
    return
  }
  func.func @transform_0(%arg0: i32) -> (i32, i32, i32) {
    %c0_i32 = arith.constant 0 : i32
    %c0_i32_0 = arith.constant 0 : i32
    %c0_i32_1 = arith.constant 0 : i32
    return %c0_i32, %arg0, %c0_i32_0 : i32, i32, i32
  }
  func.func @transform_1(%arg0: i32) -> (i32, i32, i32) {
    %c0_i32 = arith.constant 0 : i32
    %c0_i32_0 = arith.constant 0 : i32
    %c0_i32_1 = arith.constant 0 : i32
    %c0_i32_2 = arith.constant 0 : i32
    return %c0_i32, %c0_i32_0, %c0_i32_1 : i32, i32, i32
  }
  func.func @transform_2(%arg0: i32) -> (i32, i32, i32) {
    %c0_i32 = arith.constant 0 : i32
    %c0_i32_0 = arith.constant 0 : i32
    %c0_i32_1 = arith.constant 0 : i32
    %c0_i32_2 = arith.constant 0 : i32
    return %c0_i32, %c0_i32_0, %c0_i32_1 : i32, i32, i32
  }
  func.func @transform_3(%arg0: i32) -> (i32, i32, i32) {
    %c0_i32 = arith.constant 0 : i32
    %c0_i32_0 = arith.constant 0 : i32
    %c0_i32_1 = arith.constant 0 : i32
    return %c0_i32, %arg0, %c0_i32_0 : i32, i32, i32
  }
  func.func @transform_4(%arg0: i32) -> (i32, i32, i32) {
    %c0_i32 = arith.constant 0 : i32
    %c0_i32_0 = arith.constant 0 : i32
    %c0_i32_1 = arith.constant 0 : i32
    return %c0_i32, %arg0, %c0_i32_0 : i32, i32, i32
  }
}

</mosaic_0001>

<bundles_post_ra>
// kernel: tpu_custom_call.1
= control target key start
LH: loop header
LB: loop body
LE: loop exit
PB: predicated region body
PF: predicated region fallthrough
CT: control target
= control target key end

     0   :  { %10 = vsyncpa [#allocation3], 0  ;;  %vm31_vm0 = vcmask 261120   ;;  %s582_s0 = inlined_call_operand.vmem [shape: f32[2,16,32], index: 0, kind: input, shape index: {}]   ;;  %s583_s1 = inlined_call_operand.vmem [shape: f32[2,32,16], index: 1, kind: input, shape index: {}]   ;;  %s584_s2 = inlined_call_operand.vmem [shape: f32[2,1,16], index: 2, kind: input, shape index: {}]   ;;  %s585_s3 = inlined_call_operand.hbm [shape: f32[2,16,16], index: 3, kind: output, shape index: {0}]   ;;  %s586_s4 = inlined_call_operand.hbm [shape: f32[2,16,16], index: 4, kind: output, shape index: {1}]  }
   0x1   :  { %v18_v0 = vld [vmem:[%s583_s1] sm:$0xff]  ;;  %v19_v1 = vld [vmem:[%s583_s1 + $0x8] sm:$0xff]  ;;  %v20_v5 = vld [vmem:[%s583_s1 + $0x10] sm:$0xff] }
   0x2   :  { %v316_v2 = vld [vmem:[%s583_s1 + $0x20] sm:$0xff]  ;;  %v360_v3 = vpack.c.bf16 %v19_v1, %v18_v0  ;;  %v317_v4 = vld [vmem:[%s583_s1 + $0x28] sm:$0xff]  ;;  %v21_v6 = vld [vmem:[%s583_s1 + $0x18] sm:$0xff] }
   0x3   :  { %v368_v7 = vpack.c.bf16 %v317_v4, %v316_v2  ;;  %v364_v8 = vpack.c.bf16 %v21_v6, %v20_v5  ;;  %v318_v9 = vld [vmem:[%s583_s1 + $0x30] sm:$0xff]  ;;  %v319_v10 = vld [vmem:[%s583_s1 + $0x38] sm:$0xff]  ;;  %v23_v11 = vld [vmem:[%s582_s0] sm:$0xff] }
   0x4   :  { %361 = vmatprep.subr.bf16.mxu0 %v360_v3  ;;  %v372_v12 = vpack.c.bf16 %v319_v10, %v318_v9  ;;  %346 = vmatprep.mubr.msk.f32.mxu0 %vm31_vm0, %v23_v11  ;;  %v321_v13 = vld [vmem:[%s582_s0 + $0x10] sm:$0xff] }
   0x5   :  { %369 = vmatprep.subr.bf16.mxu1 %v368_v7  ;;  %363 = vmatpush3.bf16.msra.mxu0 %v360_v3 }
   0x6   :  { %11 = vsyncpa [#allocation5], 0  ;;  %371 = vmatpush3.bf16.msra.mxu1 %v368_v7  ;;  %365 = vmatprep.subr.bf16.mxu0 %v364_v8  ;;  %v24_v14 = vld [vmem:[%s582_s0 + $0x8] sm:$0xff]  ;;  %v322_v15 = vld [vmem:[%s582_s0 + $0x18] sm:$0xff]  ;;  %vm113_vm1 = vcmask 130048   ;;  %s452_s0 = smov [#allocation4]  }
   0x7   :  { %373 = vmatprep.subr.bf16.mxu1 %v372_v12  ;;  %357 = vmatprep.mubr.msk.f32.mxu1 %vm31_vm0, %v321_v13  ;;  %v313_v16 = vld [vmem:[%s584_s2] ss:$0 sm:$0xff]  ;;  %v323_v18 = vld [vmem:[%s584_s2 + $0x1] ss:$0 sm:$0xff]  ;;  %s295_s2 = sshll.u32 %s452_s0, 4  ;;  %s453_s16 = smov [#allocation2]   ;;  %s296_s2 = int_to_ptr.vmem [resolvable:$true] %s295_s2 }
   0x8   :  { %s283_s17 = sshll.u32 %s453_s16, 4  ;;  %s404_s18 = scalar_lea.vmem %s296_s2, 512  ;;  %s549_s17 = int_to_ptr.vmem [resolvable:$true] %s283_s17 }
   0x9   :  { %367 = vmatpush3.bf16.msra.mxu0 %v364_v8  ;;  %p405_p0 = scmp.ne.s32.totalorder %s296_s2, %s404_s18  ;;  %p409_p1 = scmp.lt.s32.totalorder %s296_s2, %s296_s2 }
   0xa   :  { %375 = vmatpush3.bf16.msra.mxu1 %v372_v12  ;;  %p410_p2 = scmp.lt.s32.totalorder %s404_s18, %s404_s18 }
   0xc   :  { %347 = vmatmul.mubr.msk.f32.vlgmr.msra.gmra.mrb[0].mxu0 %vm31_vm0, %v24_v14  ;;  %p411_p3 = por %p410_p2, %p409_p1 }
   0xd   :  { %358 = vmatmul.mubr.msk.f32.vlgmr.msra.gmra.mrb[0].mxu1 %vm31_vm0, %v322_v15 }
   0xe   :  { %p412_p4 = pnand %p411_p3, %p405_p0 }
  0xdf   :  { %v348_v17 = vpop.f32.mrb[0].mxu0 }
  0xe0   :  { %v359_v19 = vpop.f32.mrb[0].mxu1  ;;  %v104_v20 = vpop.f32.mrb[1].mxu0  ;;  %v110_v25 = vadd.f32 %v348_v17, %v313_v16 }
  0xe1   :  { %v105_v21 = vadd.f32 %v313_v16, %v104_v20  ;;  %v235_v22 = vpop.f32.mrb[1].mxu1  ;;  %v241_v23 = vadd.f32 %v359_v19, %v323_v18 }
  0xe2   :  { %v236_v24 = vadd.f32 %v323_v18, %v235_v22  ;;  %v117_v29 = vsel %vm113_vm1, %v110_v25, -inf }
  0xe3   :  { %v114_v26 = vsel %vm113_vm1, %v105_v21, -inf  ;;  %v247_v28 = vsel %vm113_vm1, %v241_v23, -inf }
  0xe4   :  { %v244_v27 = vsel %vm113_vm1, %v236_v24, -inf  ;;  %115 = vmax.xlane.f32.xlu0 %v114_v26 }
  0xe5   :  { %245 = vmax.xlane.f32.xlu1 %v244_v27 }
  0xe8   :  { %118 = vmax.xlane.f32.xlu0 %v117_v29 }
  0xe9   :  { %248 = vmax.xlane.f32.xlu1 %v247_v28 }
 0x171   :  { %v116_v30 = vpop.xlane.xlu0 %115 }
 0x172   :  { %v246_v31 = vpop.xlane.xlu1 %245  ;;  %v120_v32 = vsub.f32 %v105_v21, %v116_v30 }
 0x173   :  { %v531_v33 = vsub.f32 %v236_v24, %v246_v31 }
 0x174   :  { %v122_v34 = vmul.f32 1.442695, %v120_v32 }
 0x175   :  { %v252_v35 = vmul.f32 1.442695, %v531_v33  ;;  %v119_v36 = vpop.xlane.xlu0 %118 }
 0x176   :  { %380 = vpow2.f32 %v122_v34  ;;  %v249_v37 = vpop.xlane.xlu1 %248  ;;  %v121_v38 = vsub.f32 %v110_v25, %v119_v36 }
 0x177   :  { %v534_v39 = vsub.f32 %v241_v23, %v249_v37  ;;  %382 = vpow2.f32 %v252_v35 }
 0x178   :  { %v124_v40 = vmul.f32 1.442695, %v121_v38 }
 0x179   :  { %v254_v41 = vmul.f32 1.442695, %v534_v39 }
 0x17a   :  { %384 = vpow2.f32 %v124_v40 }
 0x17b   :  { %386 = vpow2.f32 %v254_v41 }
 0x180   :  { %v381_v42 = vpop.eup %380 }
 0x181   :  { %v126_v43 = vsel %vm113_vm1, %v381_v42, 0.0  ;;  %v383_v44 = vpop.eup %382 }
 0x182   :  { %127 = vadd.xlane.f32.xlu0 %v126_v43  ;;  %v256_v46 = vsel %vm113_vm1, %v383_v44, 0.0 }
 0x184   :  { %v385_v45 = vpop.eup %384 }
 0x185   :  { %v129_v47 = vsel %vm113_vm1, %v385_v45, 0.0  ;;  %v387_v48 = vpop.eup %386 }
 0x186   :  { %257 = vadd.xlane.f32.xlu0 %v256_v46  ;;  %130 = vadd.xlane.f32.xlu1 %v129_v47  ;;  %v259_v49 = vsel %vm113_vm1, %v387_v48, 0.0 }
 0x18a   :  { %260 = vadd.xlane.f32.xlu1 %v259_v49 }
 0x20f   :  { %v128_v50 = vpop.xlane.xlu0 %127 }
 0x210   :  { %388 = vlog2.f32 %v128_v50 }
 0x211   :  { %390 = vrcp.f32 %v128_v50 }
 0x213   :  { %v131_v51 = vpop.xlane.xlu1 %130  ;;  %v258_v52 = vpop.xlane.xlu0 %257 }
 0x214   :  { %392 = vlog2.f32 %v131_v51 }
 0x215   :  { %394 = vrcp.f32 %v131_v51 }
 0x216   :  { %396 = vlog2.f32 %v258_v52 }
 0x217   :  { %398 = vrcp.f32 %v258_v52  ;;  %v261_v53 = vpop.xlane.xlu1 %260 }
 0x218   :  { %400 = vlog2.f32 %v261_v53 }
 0x219   :  { %402 = vrcp.f32 %v261_v53 }
 0x21a   :  { %v389_v54 = vpop.eup %388 }
 0x21b   :  { %v391_v55 = vpop.eup %390  ;;  %v133_v56 = vmul.f32 0.6931472, %v389_v54 }
 0x21c   :  { %v142_v57 = vmul.f32 %v391_v55, %v381_v42 }
 0x21d   :  { %v136_v58 = vsub.f32 %v120_v32, %v133_v56 }
 0x21e   :  { %v393_v59 = vpop.eup %392  ;;  %144 = vst.msk [vmem:[#allocation4] sm:$0xff] %vm113_vm1, %v142_v57 }
 0x21f   :  { %v395_v60 = vpop.eup %394  ;;  %138 = vst.msk [vmem:[#allocation2] sm:$0xff] %vm113_vm1, %v136_v58  ;;  %v135_v61 = vmul.f32 0.6931472, %v393_v59 }
 0x220   :  { %v397_v62 = vpop.eup %396  ;;  %v143_v63 = vmul.f32 %v395_v60, %v385_v45 }
 0x221   :  { %v399_v0 = vpop.eup %398  ;;  %v137_v1 = vsub.f32 %v121_v38, %v135_v61  ;;  %v263_v2 = vmul.f32 0.6931472, %v397_v62 }
 0x222   :  { %v401_v3 = vpop.eup %400  ;;  %145 = vst.msk [vmem:[#allocation4 + $0x8] sm:$0xff] %vm113_vm1, %v143_v63  ;;  %v273_v4 = vmul.f32 %v399_v0, %v383_v44 }
 0x223   :  { %v403_v5 = vpop.eup %402  ;;  %139 = vst.msk [vmem:[#allocation2 + $0x8] sm:$0xff] %vm113_vm1, %v137_v1  ;;  %v266_v6 = vsub.f32 %v531_v33, %v263_v2  ;;  %v265_v7 = vmul.f32 0.6931472, %v401_v3 }
 0x224   :  { %276 = vst.msk [vmem:[#allocation4 + $0x10] sm:$0xff] %vm113_vm1, %v273_v4  ;;  %v274_v8 = vmul.f32 %v403_v5, %v387_v48 }
 0x225   :  { %269 = vst.msk [vmem:[#allocation2 + $0x10] sm:$0xff] %vm113_vm1, %v266_v6  ;;  %v267_v9 = vsub.f32 %v534_v39, %v265_v7 }
 0x226   :  { %277 = vst.msk [vmem:[#allocation4 + $0x18] sm:$0xff] %vm113_vm1, %v274_v8 }
 0x227   :  { %270 = vst.msk [vmem:[#allocation2 + $0x18] sm:$0xff] %vm113_vm1, %v267_v9 }
 0x228   :  { %415 = shalt.err (!%p412_p4)
}
 0x229   :  { %s416_s21 = scalar_lea.hbm %s586_s4, 512 }
 0x22a   :  { %p417_p5 = scmp.ne.s32.totalorder %s586_s4, %s416_s21  ;;  %p420_p6 = scmp.lt.u32.totalorder %s416_s21, %s586_s4 }
 0x22c   :  { %p422_p7 = pnand %p420_p6, %p417_p5 }
 0x22e   :  { %425 = shalt.err (!%p422_p7)
}
 0x22f   :  { %s454_s26 = smov 128   ;;  %s455_s27 = smov 8  }
 0x230   :  { %301 = dma.vmem_to_hbm [thread:$0]  %s296_s2, 512, %s586_s4, [#allocation5], %s454_s26, %s454_s26, %s455_s27  }
 0x231   :  { %s426_s30 = scalar_lea.vmem %s549_s17, 512  ;;  %p431_p9 = scmp.lt.s32.totalorder %s549_s17, %s549_s17 }
 0x232   :  { %p427_p8 = scmp.ne.s32.totalorder %s549_s17, %s426_s30  ;;  %p432_p10 = scmp.lt.s32.totalorder %s426_s30, %s426_s30 }
 0x234   :  { %p433_p11 = por %p432_p10, %p431_p9 }
 0x236   :  { %p434_p12 = pnand %p433_p11, %p427_p8 }
 0x238   :  { %437 = shalt.err (!%p434_p12)
}
 0x239   :  { %s438_s7 = scalar_lea.hbm %s585_s3, 512 }
 0x23a   :  { %p439_p13 = scmp.ne.s32.totalorder %s585_s3, %s438_s7  ;;  %p442_p0 = scmp.lt.u32.totalorder %s438_s7, %s585_s3 }
 0x23c   :  { %p444_p1 = pnand %p442_p0, %p439_p13 }
 0x23e   :  { %447 = shalt.err (!%p444_p1)
}
 0x23f   :  { %289 = dma.vmem_to_hbm [thread:$0]  %s549_s17, 512, %s585_s3, [#allocation3], %s454_s26, %s454_s26, %s455_s27  }
 0x240   :  { %448 = dma.done.wait [#allocation3], 512  }
 0x241   :  { %449 = vsyncadd [#allocation3], 4294966784 }
 0x242   :  { %450 = dma.done.wait [#allocation5], 512  }
 0x243   :  { %451 = vsyncadd [#allocation5], 4294966784 }
 0x244   :  { %308 = vsyncpa [#allocation3], 1 }
 0x245   :  { %309 = vsyncpa [#allocation5], 1 }

</bundles_post_ra>
